<compile_context>
chip_gen: v7x
topology: tpu7x:2x2x1
jax: 0.10.0
libtpu: 0.0.40
codegen_flags: <defaults>
</compile_context>

<pallas_src>
import math
import functools

import jax
import jax.numpy as jnp
from jax.experimental import pallas as pl
from jax.experimental.pallas import tpu as pltpu


_LANE = 128
_SUBLANE_BF16 = 16            # bf16 packs 16 sublanes per vreg


def _round_up(x, m):
    return ((x + m - 1) // m) * m


def _cdiv(a, b):
    return -(-a // b)


def _pad_to(x, shape):
    pads = [(0, t - s) for s, t in zip(x.shape, shape)]
    if all(p == (0, 0) for p in pads):
        return x
    return jnp.pad(x, pads)


@functools.lru_cache(maxsize=1)
def _hw_config():
    """Per-generation tiling/VMEM budgets (conservative fallback = v7x)."""
    cap = 64 * 1024 * 1024
    try:
        info = pltpu.get_tpu_info()
        for attr in ("vmem_capacity_bytes", "vmem_size_bytes", "vmem_bytes"):
            v = getattr(info, attr, None)
            if v:
                cap = int(v)
                break
    except Exception:
        pass
    if cap >= 100 * 1024 * 1024:
        # v5e / v6e: 128 MiB VMEM -> big tiles, per-batch-resident X more often.
        return dict(vmem_limit=96 * 1024 * 1024, tm_max=512, tk_max=2048,
                    blk_cap=16 * 1024 * 1024, resident_cap=16 * 1024 * 1024)
    # v7x (64 MiB VMEM) or unknown.
    return dict(vmem_limit=48 * 1024 * 1024, tm_max=256, tk_max=1024,
                blk_cap=8 * 1024 * 1024, resident_cap=8 * 1024 * 1024)


def _pick_tiles(N, B, feat, feat_res, cfg):
    """Pick (tm, nm, tk, nk, resident) hugging N to minimize pad waste."""
    n16 = _round_up(N, _SUBLANE_BF16)
    # Row tile: multiple of 16 (bf16 sublane packing), as large as allowed.
    nmt = max(1, _cdiv(n16, cfg["tm_max"]))
    if B * nmt < 2 and n16 >= 32:        # keep both v7x TensorCores busy
        nmt = 2
    tm = _round_up(_cdiv(N, nmt), _SUBLANE_BF16)
    while tm > _SUBLANE_BF16 and tm * feat * 4 > cfg["blk_cap"]:
        nmt += 1
        tm = _round_up(_cdiv(N, nmt), _SUBLANE_BF16)
    nm = tm * _cdiv(N, tm)
    # Contraction tile: multiple of 128, hugging N, capped by per-block bytes.
    n128 = _round_up(N, _LANE)
    nkt = max(1, _cdiv(n128, cfg["tk_max"]))
    tk = _round_up(_cdiv(N, nkt), _LANE)
    while tk > _LANE and (tm * tk * 2 > cfg["blk_cap"]
                          or tk * feat * 2 > cfg["blk_cap"]):
        nkt += 1
        tk = _round_up(_cdiv(N, nkt), _LANE)
    nk = tk * _cdiv(N, tk)
    resident = nk * feat_res * 2 <= cfg["resident_cap"]
    return tm, nm, tk, nk, resident


# --------------------------------------------------------------------------
# Kernels
# --------------------------------------------------------------------------

def _gcn_axw_kernel(a_ref, x_ref, w_ref, b_ref, o_ref, acc_ref, *,
                    tk, x_resident):
    """out[b, i_tile] = (sum_k A[b, i_tile, k_tile] @ X[b, k_tile]) @ W + bias.

    a_ref: (1, tm, tk) bf16
    x_ref: (1, nk, fi) bf16 (resident) or (1, tk, fi) bf16 (streamed)
    w_ref: (fi, fo) bf16     b_ref: (1, fo) f32
    o_ref: (1, tm, fo) f32   acc_ref: (tm, fi) f32 scratch
    """
    k = pl.program_id(2)
    if x_resident:
        x_blk = x_ref[0, pl.ds(pl.multiple_of(k * tk, _LANE), tk), :]
    else:
        x_blk = x_ref[0]
    prod = jnp.dot(a_ref[0], x_blk, preferred_element_type=jnp.float32)

    @pl.when(k == 0)
    def _():
        acc_ref[...] = prod          # direct write: no zero-init pass

    @pl.when(k > 0)
    def _():
        acc_ref[...] += prod

    @pl.when(k == pl.num_programs(2) - 1)
    def _():
        out = jnp.dot(acc_ref[...].astype(jnp.bfloat16), w_ref[...],
                      preferred_element_type=jnp.float32)
        o_ref[0] = (out + b_ref[...]).astype(o_ref.dtype)


def _gcn_af_kernel(a_ref, f_ref, b_ref, o_ref, acc_ref, *, tk, f_resident):
    """out[b, i_tile] = (sum_k A[b, i_tile, k_tile] @ F[., k_tile]) + bias.

    F already carries the weight (F = X @ W, or F = W when X is identity).
    a_ref: (1, tm, tk) bf16
    f_ref: (1, nk, fo) bf16 (resident) or (1, tk, fo) bf16 (streamed)
    b_ref: (1, fo) f32   o_ref: (1, tm, fo) f32   acc_ref: (tm, fo) f32
    """
    k = pl.program_id(2)
    if f_resident:
        f_blk = f_ref[0, pl.ds(pl.multiple_of(k * tk, _LANE), tk), :]
    else:
        f_blk = f_ref[0]
    prod = jnp.dot(a_ref[0], f_blk, preferred_element_type=jnp.float32)

    @pl.when(k == 0)
    def _():
        acc_ref[...] = prod

    @pl.when(k > 0)
    def _():
        acc_ref[...] += prod

    @pl.when(k == pl.num_programs(2) - 1)
    def _():
        o_ref[0] = (acc_ref[...] + b_ref[...]).astype(o_ref.dtype)


def _xw_kernel(x_ref, w_ref, o_ref):
    """Small pre-multiply F[b, i_tile] = X[b, i_tile] @ W (fo <= fi path)."""
    o_ref[0] = jnp.dot(x_ref[0], w_ref[...],
                       preferred_element_type=jnp.float32).astype(o_ref.dtype)


# --------------------------------------------------------------------------
# Wrappers
# --------------------------------------------------------------------------

def _premul_xw(x_p, w_bf, tr, cfg):
    """F = X @ W with X (B, nk, fi) bf16, W (fi, fo) bf16 -> (B, nk, fo) bf16."""
    B, nk, fi = x_p.shape
    fo = w_bf.shape[1]
    return pl.pallas_call(
        _xw_kernel,
        out_shape=jax.ShapeDtypeStruct((B, nk, fo), jnp.bfloat16),
        grid_spec=pltpu.PrefetchScalarGridSpec(
            num_scalar_prefetch=0,
            grid=(B, nk // tr),
            in_specs=[pl.BlockSpec((1, tr, fi), lambda b, i: (b, i, 0)),
                      pl.BlockSpec((fi, fo), lambda b, i: (0, 0))],
            out_specs=pl.BlockSpec((1, tr, fo), lambda b, i: (b, i, 0)),
        ),
        compiler_params=pltpu.CompilerParams(
            dimension_semantics=("parallel", "parallel"),
            vmem_limit_bytes=cfg["vmem_limit"]),
    )(x_p, w_bf)


@functools.partial(jax.jit, static_argnames=("force_tiled",))
def gcn_layer_kipf(A, X, weight, bias=None, *, force_tiled=False):
    """Pallas implementation of GCNLayer_Kipf.forward.

    A: [B, N, N], X: [B, N, n_in] or None (identity features),
    weight: [n_in, n_out], bias: [n_out] or None.  Returns [B, N, n_out] f32.
    Callers stacking layers may pass A already cast to bf16 to skip the
    wrapper-side cast pass.
    """
    B, N, _ = A.shape
    n_in, n_out = weight.shape
    cfg = _hw_config()

    # Lane-dense (128-aligned) feature dims.
    fi = _round_up(n_in, _LANE)
    fo = _round_up(n_out, _LANE)

    if X is None and n_in != N:
        raise ValueError("X=None requires weight.shape[0] == num_nodes")

    # Prefer the premultiply path (A @ (X@W)) whenever the padded output width
    # is no wider than the padded input width (ties included): smaller
    # accumulator and no per-row-tile epilogue matmul.
    use_premul = (X is not None) and (fo <= fi)
    feat = max(fi, fo)
    feat_res = fo if (use_premul or X is None) else fi
    tm, nm, tk, nk, resident = _pick_tiles(N, B, feat, feat_res, cfg)
    if force_tiled:
        resident = False

    # Cast/pad once in the wrapper (zero pads are exact; fused into one pass).
    A_bf = A if A.dtype == jnp.bfloat16 else A.astype(jnp.bfloat16)
    A_p = _pad_to(A_bf, (B, nm, nk))
    w_bf = _pad_to(weight.astype(jnp.bfloat16), (fi, fo))
    if bias is None:
        b_p = jnp.zeros((1, fo), jnp.float32)
    else:
        b_p = _pad_to(bias.astype(jnp.float32).reshape(1, n_out), (1, fo))

    grid = (B, nm // tm, nk // tk)
    a_spec = pl.BlockSpec((1, tm, tk), lambda b, i, k: (b, i, k))
    b_spec = pl.BlockSpec((1, fo), lambda b, i, k: (0, 0))        # resident
    o_spec = pl.BlockSpec((1, tm, fo), lambda b, i, k: (b, i, 0))
    out_shape = jax.ShapeDtypeStruct((B, nm, fo), jnp.float32)
    cparams = pltpu.CompilerParams(
        dimension_semantics=("parallel", "parallel", "arbitrary"),
        vmem_limit_bytes=cfg["vmem_limit"])

    if X is None or use_premul:
        # out = A @ F + b, with F = W (identity features) or F = X @ W.
        if X is None:
            f = _pad_to(weight.astype(jnp.bfloat16), (nk, fo))[None]   # (1,nk,fo)
            if resident:
                f_spec = pl.BlockSpec((1, nk, fo), lambda b, i, k: (0, 0, 0))
            else:
                f_spec = pl.BlockSpec((1, tk, fo), lambda b, i, k: (0, k, 0))
        else:
            X_p = _pad_to(X.astype(jnp.bfloat16), (B, nk, fi))
            f = _premul_xw(X_p, w_bf, tk, cfg)                          # (B,nk,fo)
            if resident:
                f_spec = pl.BlockSpec((1, nk, fo), lambda b, i, k: (b, 0, 0))
            else:
                f_spec = pl.BlockSpec((1, tk, fo), lambda b, i, k: (b, k, 0))
        kernel = functools.partial(_gcn_af_kernel, tk=tk, f_resident=resident)
        out = pl.pallas_call(
            kernel,
            out_shape=out_shape,
            grid_spec=pltpu.PrefetchScalarGridSpec(
                num_scalar_prefetch=0, grid=grid,
                in_specs=[a_spec, f_spec, b_spec],
                out_specs=o_spec,
                scratch_shapes=[pltpu.VMEM((tm, fo), jnp.float32)]),
            compiler_params=cparams,
        )(A_p, f, b_p)
    else:
        # out = (A @ X) @ W + b, with A@X accumulated in VMEM scratch.
        X_p = _pad_to(X.astype(jnp.bfloat16), (B, nk, fi))
        if resident:
            x_spec = pl.BlockSpec((1, nk, fi), lambda b, i, k: (b, 0, 0))
        else:
            x_spec = pl.BlockSpec((1, tk, fi), lambda b, i, k: (b, k, 0))
        # TODO(synk): tile W over an extra fo grid axis when fi*fo*2 bytes
        # exceeds the per-block VMEM cap (very large feature dims on v7x).
        w_spec = pl.BlockSpec((fi, fo), lambda b, i, k: (0, 0))    # resident bf16
        kernel = functools.partial(_gcn_axw_kernel, tk=tk, x_resident=resident)
        out = pl.pallas_call(
            kernel,
            out_shape=out_shape,
            grid_spec=pltpu.PrefetchScalarGridSpec(
                num_scalar_prefetch=0, grid=grid,
                in_specs=[a_spec, x_spec, w_spec, b_spec],
                out_specs=o_spec,
                scratch_shapes=[pltpu.VMEM((tm, fi), jnp.float32)]),
            compiler_params=cparams,
        )(A_p, X_p, w_bf, b_p)

    return out[:, :N, :n_out]


def init_params(key, n_in, n_out, bias=True):
    """Matches GCNLayer_Kipf.reset_parameters: uniform(-stdv, stdv), stdv=1/sqrt(n_out)."""
    stdv = 1.0 / math.sqrt(n_out)
    kw, kb = jax.random.split(key)
    weight = jax.random.uniform(kw, (n_in, n_out), jnp.float32, -stdv, stdv)
    b = jax.random.uniform(kb, (n_out,), jnp.float32, -stdv, stdv) if bias else None
    return weight, b


if __name__ == "__main__":
    key = jax.random.PRNGKey(0)
    k_a, k_x, k_p, k_w2, k_w3 = jax.random.split(key, 5)

    B, N, n_in, n_out = 2, 16, 8, 32

    # Synthetic row-normalized adjacency and node features.
    A_raw = jax.random.uniform(k_a, (B, N, N), jnp.float32)
    A = A_raw / jnp.sum(A_raw, axis=-1, keepdims=True)
    X = jax.random.normal(k_x, (B, N, n_in), jnp.float32)

    weight, bias = init_params(k_p, n_in, n_out, bias=True)

    # Path 1: padded fo <= fi -> hoisted premultiply: A @ (X @ W) + b.
    out = jax.block_until_ready(gcn_layer_kipf(A, X, weight, bias))
    ref = jnp.matmul(jnp.matmul(A, X), weight) + bias
    assert out.shape == (B, N, n_out)
    assert jnp.allclose(out, ref, atol=1e-2, rtol=1e-2), float(jnp.max(jnp.abs(out - ref)))

    # Path 2: X = None (identity features) -> short-circuit to A @ W, no bias.
    W2 = jax.random.normal(k_w2, (N, n_out), jnp.float32) * 0.1
    out_id = jax.block_until_ready(gcn_layer_kipf(A, None, W2, None))
    ref_id = jnp.matmul(A, W2)
    assert jnp.allclose(out_id, ref_id, atol=1e-2, rtol=1e-2), \
        float(jnp.max(jnp.abs(out_id - ref_id)))

    # Path 3: padded fo > fi -> (A @ X) @ W + b kernel with resident X.
    n_in3, n_out3 = 32, 160
    X3 = jax.random.normal(k_x, (B, N, n_in3), jnp.float32) * 0.1
    W3, b3 = init_params(k_w3, n_in3, n_out3, bias=True)
    out3 = jax.block_until_ready(gcn_layer_kipf(A, X3, W3, b3))
    ref3 = jnp.matmul(jnp.matmul(A, X3), W3) + b3
    assert jnp.allclose(out3, ref3, atol=1e-2, rtol=1e-2), \
        float(jnp.max(jnp.abs(out3 - ref3)))

    # Path 4: force the streamed (non-resident) X/F kernel variants as well.
    out4 = jax.block_until_ready(gcn_layer_kipf(A, X3, W3, b3, force_tiled=True))
    assert jnp.allclose(out4, ref3, atol=1e-2, rtol=1e-2)
    out5 = jax.block_until_ready(gcn_layer_kipf(A, X, weight, bias, force_tiled=True))
    assert jnp.allclose(out5, ref, atol=1e-2, rtol=1e-2)

    print("KERNEL_OK")
</pallas_src>

<mosaic_0001>
module attributes {stable_mosaic.version = 11 : i64} {
  func.func @_xw_kernel(%arg0: i32, %arg1: i32, %arg2: memref<1x128x128xbf16, #tpu.memory_space<vmem>>, %arg3: memref<128x128xbf16, #tpu.memory_space<vmem>>, %arg4: memref<1x128x128xbf16, #tpu.memory_space<vmem>>) attributes {dimension_semantics = [#tpu.dimension_semantics<parallel>, #tpu.dimension_semantics<parallel>], iteration_bounds = array<i64: 2, 1>, scalar_prefetch = 0 : i64, scratch_operands = 0 : i64, tpu.core_type = #tpu.core_type<tc>, window_params = [{transform_indices = @transform_0, window_bounds = array<i64: 1, 128, 128>}, {pipeline_mode = #tpu.pipeline_mode<synchronous>, transform_indices = @transform_1, window_bounds = array<i64: 128, 128>}, {transform_indices = @transform_2, window_bounds = array<i64: 1, 128, 128>}]} {
    %c0 = arith.constant 0 : index
    %c0_0 = arith.constant 0 : index
    %c0_1 = arith.constant 0 : index
    %0 = vector.load %arg2[%c0, %c0_0, %c0_1] : memref<1x128x128xbf16, #tpu.memory_space<vmem>>, vector<1x128x128xbf16>
    %1 = vector.shape_cast %0 : vector<1x128x128xbf16> to vector<128x128xbf16>
    %c0_2 = arith.constant 0 : index
    %c0_3 = arith.constant 0 : index
    %2 = vector.load %arg3[%c0_2, %c0_3] : memref<128x128xbf16, #tpu.memory_space<vmem>>, vector<128x128xbf16>
    %cst = arith.constant dense<0.000000e+00> : vector<128x128xf32>
    %3 = tpu.matmul %1, %2, %cst {dimension_numbers = #tpu.dot_dimension_numbers<[1], [0], [0], [1], [0, 0, 1, 1], [], []>} : vector<128x128xbf16>, vector<128x128xbf16>, vector<128x128xf32> -> vector<128x128xf32>
    %4 = arith.truncf %3 : vector<128x128xf32> to vector<128x128xbf16>
    %c0_4 = arith.constant 0 : index
    %c0_5 = arith.constant 0 : index
    %c0_6 = arith.constant 0 : index
    %5 = vector.load %arg4[%c0_4, %c0_5, %c0_6] : memref<1x128x128xbf16, #tpu.memory_space<vmem>>, vector<1x128x128xbf16>
    %6 = vector.shape_cast %5 : vector<1x128x128xbf16> to vector<128x128xbf16>
    %7 = vector.shape_cast %4 : vector<128x128xbf16> to vector<1x128x128xbf16>
    tpu.vector_store %arg4[%c0_4, %c0_5, %c0_6], %7 {strides = array<i32>} : memref<1x128x128xbf16, #tpu.memory_space<vmem>>, vector<1x128x128xbf16>,
    return
  }
  func.func @transform_0(%arg0: i32, %arg1: i32) -> (i32, i32, i32) {
    %c0_i32 = arith.constant 0 : i32
    %c0_i32_0 = arith.constant 0 : i32
    return %arg0, %arg1, %c0_i32 : i32, i32, i32
  }
  func.func @transform_1(%arg0: i32, %arg1: i32) -> (i32, i32) {
    %c0_i32 = arith.constant 0 : i32
    %c0_i32_0 = arith.constant 0 : i32
    %c0_i32_1 = arith.constant 0 : i32
    return %c0_i32, %c0_i32_0 : i32, i32
  }
  func.func @transform_2(%arg0: i32, %arg1: i32) -> (i32, i32, i32) {
    %c0_i32 = arith.constant 0 : i32
    %c0_i32_0 = arith.constant 0 : i32
    return %arg0, %arg1, %c0_i32 : i32, i32, i32
  }
}

module attributes {stable_mosaic.version = 11 : i64} {
  func.func @_gcn_af_kernel(%arg0: i32, %arg1: i32, %arg2: i32, %arg3: memref<1x16x128xbf16, #tpu.memory_space<vmem>>, %arg4: memref<1x128x128xbf16, #tpu.memory_space<vmem>>, %arg5: memref<1x128xf32, #tpu.memory_space<vmem>>, %arg6: memref<1x16x128xf32, #tpu.memory_space<vmem>>, %arg7: memref<16x128xf32, #tpu.memory_space<vmem>>) attributes {dimension_semantics = [#tpu.dimension_semantics<parallel>, #tpu.dimension_semantics<parallel>, #tpu.dimension_semantics<arbitrary>], iteration_bounds = array<i64: 2, 1, 1>, scalar_prefetch = 0 : i64, scratch_operands = 1 : i64, tpu.core_type = #tpu.core_type<tc>, window_params = [{transform_indices = @transform_0, window_bounds = array<i64: 1, 16, 128>}, {transform_indices = @transform_1, window_bounds = array<i64: 1, 128, 128>}, {pipeline_mode = #tpu.pipeline_mode<synchronous>, transform_indices = @transform_2, window_bounds = array<i64: 1, 128>}, {transform_indices = @transform_3, window_bounds = array<i64: 1, 16, 128>}]} {
    %c128_i32 = arith.constant 128 : i32
    %0 = arith.muli %arg2, %c128_i32 : i32
    %1 = tpu.assume_multiple %0, 128 : i32
    %c0 = arith.constant 0 : index
    %2 = arith.index_cast %1 : i32 to index
    %c0_0 = arith.constant 0 : index
    %3 = vector.load %arg4[%c0, %2, %c0_0] : memref<1x128x128xbf16, #tpu.memory_space<vmem>>, vector<1x128x128xbf16>
    %4 = vector.shape_cast %3 : vector<1x128x128xbf16> to vector<128x128xbf16>
    %c0_1 = arith.constant 0 : index
    %c0_2 = arith.constant 0 : index
    %c0_3 = arith.constant 0 : index
    %5 = vector.load %arg3[%c0_1, %c0_2, %c0_3] : memref<1x16x128xbf16, #tpu.memory_space<vmem>>, vector<1x16x128xbf16>
    %6 = vector.shape_cast %5 : vector<1x16x128xbf16> to vector<16x128xbf16>
    %cst = arith.constant dense<0.000000e+00> : vector<16x128xf32>
    %7 = tpu.matmul %6, %4, %cst {dimension_numbers = #tpu.dot_dimension_numbers<[1], [0], [0], [1], [0, 0, 1, 1], [], []>} : vector<16x128xbf16>, vector<128x128xbf16>, vector<16x128xf32> -> vector<16x128xf32>
    %c0_i32 = arith.constant 0 : i32
    %8 = arith.cmpi eq, %arg2, %c0_i32 : i32
    %9 = arith.extui %8 : i1 to i32
    %c0_i32_4 = arith.constant 0 : i32
    %10 = arith.cmpi ne, %9, %c0_i32_4 : i32
    scf.if %10 {
      %c0_9 = arith.constant 0 : index
      %c0_10 = arith.constant 0 : index
      %17 = vector.load %arg7[%c0_9, %c0_10] : memref<16x128xf32, #tpu.memory_space<vmem>>, vector<16x128xf32>
      tpu.vector_store %arg7[%c0_9, %c0_10], %7 {strides = array<i32>} : memref<16x128xf32, #tpu.memory_space<vmem>>, vector<16x128xf32>,
    } else {
    }
    %c0_i32_5 = arith.constant 0 : i32
    %11 = arith.cmpi sgt, %arg2, %c0_i32_5 : i32
    %12 = arith.extui %11 : i1 to i32
    %c0_i32_6 = arith.constant 0 : i32
    %13 = arith.cmpi ne, %12, %c0_i32_6 : i32
    scf.if %13 {
      %c0_9 = arith.constant 0 : index
      %c0_10 = arith.constant 0 : index
      %17 = vector.load %arg7[%c0_9, %c0_10] : memref<16x128xf32, #tpu.memory_space<vmem>>, vector<16x128xf32>
      %18 = arith.addf %17, %7 : vector<16x128xf32>
      %c0_11 = arith.constant 0 : index
      %c0_12 = arith.constant 0 : index
      %19 = vector.load %arg7[%c0_11, %c0_12] : memref<16x128xf32, #tpu.memory_space<vmem>>, vector<16x128xf32>
      tpu.vector_store %arg7[%c0_11, %c0_12], %18 {strides = array<i32>} : memref<16x128xf32, #tpu.memory_space<vmem>>, vector<16x128xf32>,
    } else {
    }
    %c0_i32_7 = arith.constant 0 : i32
    %14 = arith.cmpi eq, %arg2, %c0_i32_7 : i32
    %15 = arith.extui %14 : i1 to i32
    %c0_i32_8 = arith.constant 0 : i32
    %16 = arith.cmpi ne, %15, %c0_i32_8 : i32
    scf.if %16 {
      %c0_9 = arith.constant 0 : index
      %c0_10 = arith.constant 0 : index
      %17 = vector.load %arg7[%c0_9, %c0_10] : memref<16x128xf32, #tpu.memory_space<vmem>>, vector<16x128xf32>
      %c0_11 = arith.constant 0 : index
      %c0_12 = arith.constant 0 : index
      %18 = vector.load %arg5[%c0_11, %c0_12] : memref<1x128xf32, #tpu.memory_space<vmem>>, vector<1x128xf32>
      %19 = vector.broadcast %18 : vector<1x128xf32> to vector<16x128xf32>
      %20 = arith.addf %17, %19 : vector<16x128xf32>
      %c0_13 = arith.constant 0 : index
      %c0_14 = arith.constant 0 : index
      %c0_15 = arith.constant 0 : index
      %21 = vector.load %arg6[%c0_13, %c0_14, %c0_15] : memref<1x16x128xf32, #tpu.memory_space<vmem>>, vector<1x16x128xf32>
      %22 = vector.shape_cast %21 : vector<1x16x128xf32> to vector<16x128xf32>
      %23 = vector.shape_cast %20 : vector<16x128xf32> to vector<1x16x128xf32>
      tpu.vector_store %arg6[%c0_13, %c0_14, %c0_15], %23 {strides = array<i32>} : memref<1x16x128xf32, #tpu.memory_space<vmem>>, vector<1x16x128xf32>,
    } else {
    }
    return
  }
  func.func @transform_0(%arg0: i32, %arg1: i32, %arg2: i32) -> (i32, i32, i32) {
    %c0_i32 = arith.constant 0 : i32
    return %arg0, %arg1, %arg2 : i32, i32, i32
  }
  func.func @transform_1(%arg0: i32, %arg1: i32, %arg2: i32) -> (i32, i32, i32) {
    %c0_i32 = arith.constant 0 : i32
    %c0_i32_0 = arith.constant 0 : i32
    %c0_i32_1 = arith.constant 0 : i32
    return %arg0, %c0_i32, %c0_i32_0 : i32, i32, i32
  }
  func.func @transform_2(%arg0: i32, %arg1: i32, %arg2: i32) -> (i32, i32) {
    %c0_i32 = arith.constant 0 : i32
    %c0_i32_0 = arith.constant 0 : i32
    %c0_i32_1 = arith.constant 0 : i32
    return %c0_i32, %c0_i32_0 : i32, i32
  }
  func.func @transform_3(%arg0: i32, %arg1: i32, %arg2: i32) -> (i32, i32, i32) {
    %c0_i32 = arith.constant 0 : i32
    %c0_i32_0 = arith.constant 0 : i32
    return %arg0, %arg1, %c0_i32 : i32, i32, i32
  }
}

</mosaic_0001>

<bundles_post_ra>
// kernel: gcn_layer_kipf.3
= control target key start
LH: loop header
LB: loop body
LE: loop exit
PB: predicated region body
PF: predicated region fallthrough
CT: control target
= control target key end

     0   :  { %8 = vsyncpa [#allocation4], 0  ;;  %s855_s0 = inlined_call_operand.vmem [shape: bf16[2,16,128], index: 0, kind: input, shape index: {}]   ;;  %s856_s1 = inlined_call_operand.vmem [shape: bf16[2,128,128], index: 1, kind: input, shape index: {}]   ;;  %s857_s2 = inlined_call_operand.vmem [shape: f32[1,128], index: 2, kind: input, shape index: {}]   ;;  %s858_s3 = inlined_call_operand.hbm [shape: f32[2,16,128], index: 3, kind: output, shape index: {}]  }
   0x1   :  { %10 = vsyncpa [#allocation4 + $0x1], 0  ;;  %s734_s12 = smov 0   ;;  %s736_s13 = smov 0  }
   0x2   :  { %s738_s14 = smov 0   ;;  %s740_s15 = smov 0  }
   0x3   :  { %s742_s16 = smov 0   ;;  %s744_s17 = smov 0  }
   0x4 LB: > { %s504_s18 = sadd.s32 4294967295, %s707_s17   ;;  %s505_s19 = sadd.s32 4294967294, %s707_s17   ;;  %s707_s17 = sphi %s744_s17, %s16_s17   ;;  %s703_s16 = sphi %s742_s16, %s865_s16   ;;  %s699_s15 = sphi %s740_s15, %s864_s15   ;;  %s695_s14 = sphi %s738_s14, %s863_s14   ;;  %s691_s13 = sphi %s736_s13, %s862_s13   ;;  %s687_s12 = sphi %s734_s12, %s861_s12  }
   0x5   : > { %s35_s20 = sadd.s32 1, %s703_s16  ;;  %s121_s21 = sadd.s32 1, %s695_s14 }
   0x6   : > { %p37_p0 = scmp.ge.s32.totalorder %s35_s20, 2  ;;  %p131_p1 = scmp.ne.s32.totalorder %s695_s14, %s691_s13 }
   0x7   : > { %p132_p2 = scmp.eq.s32.totalorder %s504_s18, 1  ;;  %p137_p3 = scmp.ne.s32.totalorder %s691_s13, %s687_s12 }
   0x8   : > { %s867_s20 = smov (%p37_p0, %s35_s20), 0  ;;  %p138_p5 = scmp.eq.s32.totalorder %s505_s19, 1 }
   0x9   : > { %p774_p4 = por %p132_p2, %p131_p1  ;;  %s116_s23 = ssub.s32 %s703_s16, %s867_s20 }
   0xa   : > { %p508_p6 = scmp.ge.s32.totalorder %s707_s17, 1  ;;  %p119_p7 = scmp.eq.s32.totalorder %s116_s23, 0 }
   0xb   : > { %p781_p8 = por %p138_p5, %p137_p3  ;;  %p183_p9 = scmp.lt.s32.totalorder %s707_s17, 3 }
   0xc   : > { %s787_s25 = scalar_select %p119_p7, %s695_s14, %s121_s21  }
   0xd   : > { %p184_p10 = pnand %p508_p6, %p183_p9 }
   0xe   : > { %p220_p11 = scmp.lt.s32.totalorder (!%p184_p10), %s699_s15, 1  ;;  %v709_v0 = vmov (!%p184_p10), 0.0   ;;  %vm710_vm0 = vmmov (!%p184_p10), 0   ;;  %s216_s8 = sand.u32 (!%p184_p10), 1, %s691_s13   ;;  %v523_v10 = vld [vmem:[%s857_s2] ss:$0 sm:$0xff] (!%p184_p10) }
   0xf   : > { %187 = sbr.rel (%p184_p10) target bundleno = 289 (0x121), region = 32  ;;  %541 = vmatprep.subr.bf16.mxu0 (!%p184_p10), %v709_v0  ;;  %557 = vmatprep.mubr.msk.bf16.mxu0 (!%p184_p10), %vm710_vm0, %v709_v0  ;;  %s509_s9 = sshll.u32 (!%p184_p10), %s216_s8, 4 }
  0x10   : > { %s218_s18 = scalar_lea.vmem (!%p184_p10), [#allocation3], %s509_s9  ;;  %s531_s21 = sshll.u32 (!%p184_p10), %s699_s15, 8 }
  0x11   : > { %s405_s19 = sshll.u32 (!%p184_p10), %s218_s18, 4  ;;  %s809_s28 = scalar_lea.sflag (!%p184_p10), [#allocation4], %s216_s8  ;;  %s802_s19 = int_to_ptr.vmem [resolvable:$true] %s405_s19 }
  0x12   : > { %s711_s29 = smov (!%p184_p10), [#allocation3]  }
  0x16   : > { %s221_s26 = scalar_select %p220_p11, %s699_s15, 1 }
  0x17   : > { %s629_s15 = scalar_lea.vmem %s802_s19, 256 }
  0x18   : > { %s530_s27 = sshll.u32 %s221_s26, 6  ;;  %s529_s4 = sshll.u32 %s221_s26, 3 }
  0x19   : > { %s236_s30 = scalar_lea.vmem %s856_s1, %s530_s27  ;;  %s230_s7 = scalar_lea.vmem %s855_s0, %s529_s4 }
  0x1a   : > { %v620_v1 = vld [vmem:[%s236_s30] sm:$0xff]   ;;  %v621_v2 = vld [vmem:[%s236_s30 + $0x8] sm:$0xff]   ;;  %v622_v3 = vld [vmem:[%s236_s30 + $0x10] sm:$0xff]   ;;  %s807_s27 = scalar_lea.hbm %s858_s3, %s531_s21  ;;  %p630_p12 = scmp.ne.s32.totalorder %s802_s19, %s629_s15 }
  0x1b   : > { %542 = vmatpush3.bf16.msra.mxu0 %v620_v1  ;;  %v623_v4 = vld [vmem:[%s236_s30 + $0x18] sm:$0xff]   ;;  %v624_v5 = vld [vmem:[%s236_s30 + $0x20] sm:$0xff]   ;;  %v625_v6 = vld [vmem:[%s236_s30 + $0x28] sm:$0xff]  }
  0x1c   : > { %543 = vmatprep.subr.bf16.mxu0 %v709_v0  ;;  %v626_v7 = vld [vmem:[%s236_s30 + $0x30] sm:$0xff]   ;;  %v627_v8 = vld [vmem:[%s236_s30 + $0x38] sm:$0xff]   ;;  %v628_v9 = vld [vmem:[%s230_s7] sm:$0xff]   ;;  %p631_p13 = pnand %p630_p12, %p774_p4  ;;  %s633_s30 = sshll.u32 %s711_s29, 4  ;;  %s634_s30 = int_to_ptr.vmem [resolvable:$false] %s633_s30 }
  0x1d   : > { %s635_s4 = scalar_lea.vmem %s634_s30, 512  ;;  %p636_p1 = scmp.lt.s32.totalorder %s802_s19, %s634_s30 }
  0x1e   : > { %p632_p0 = pneg %p631_p13  ;;  %p637_p2 = scmp.lt.s32.totalorder %s635_s4, %s629_s15 }
  0x1f   : > { %544 = vmatpush3.bf16.msra.mxu0 %v621_v2 }
  0x20   : > { %545 = vmatprep.subr.bf16.mxu0 %v709_v0  ;;  %p638_p3 = por %p637_p2, %p636_p1 }
  0x22   : > { %p639_p5 = pnand %p638_p3, %p632_p0 }
  0x23   : > { %546 = vmatpush3.bf16.msra.mxu0 %v622_v3 }
  0x24   : > { %547 = vmatprep.subr.bf16.mxu0 %v709_v0 }
  0x27   : > { %548 = vmatpush3.bf16.msra.mxu0 %v623_v4 }
  0x28   : > { %549 = vmatprep.subr.bf16.mxu0 %v709_v0 }
  0x2b   : > { %550 = vmatpush3.bf16.msra.mxu0 %v624_v5 }
  0x2c   : > { %551 = vmatprep.subr.bf16.mxu0 %v709_v0 }
  0x2f   : > { %552 = vmatpush3.bf16.msra.mxu0 %v625_v6 }
  0x30   : > { %553 = vmatprep.subr.bf16.mxu0 %v709_v0 }
  0x33   : > { %554 = vmatpush3.bf16.msra.mxu0 %v626_v7 }
  0x34   : > { %555 = vmatprep.subr.bf16.mxu0 %v709_v0 }
  0x37   : > { %556 = vmatpush3.bf16.msra.mxu0 %v627_v8 }
  0x3a   : > { %558 = vmatmul.mubr.bf16.vlgmr.msra.gmra.mrb[0].mxu0 %v628_v9 }
 0x10d   : > { %v350_v11 = vpop.f32.mrb[0].mxu0 }
 0x10e   : > { %v385_v12 = vadd.f32 %v523_v10, %v350_v11  ;;  %v559_v13 = vpop.f32.mrb[1].mxu0 }
 0x10f   : > { %v353_v14 = vpop.f32.mrb[2].mxu0 }
 0x110   : > { %387 = vst [vmem:[%s218_s18] sm:$0xff] %v385_v12  ;;  %v386_v15 = vadd.f32 %v523_v10, %v353_v14  ;;  %v560_v16 = vpop.f32.mrb[3].mxu0 }
 0x112   : > { %388 = vst [vmem:[%s218_s18 + $0x8] sm:$0xff] %v386_v15 }
 0x113   : > { %642 = shalt.err (!%p639_p5)
}
 0x114   : > { %s643_s5 = scalar_lea.hbm %s807_s27, 256  ;;  %s647_s8 = scalar_lea.hbm %s858_s3, 512 }
 0x115   : > { %p644_p6 = scmp.ne.s32.totalorder %s807_s27, %s643_s5  ;;  %p648_p10 = scmp.lt.u32.totalorder %s807_s27, %s858_s3 }
 0x116   : > { %p649_p11 = scmp.lt.u32.totalorder %s647_s8, %s643_s5  ;;  %p651_p13 = scmp.lt.u32.totalorder %s643_s5, %s807_s27 }
 0x117   : > { %p645_p7 = pnand %p644_p6, %p774_p4 }
 0x118   : > { %p650_p12 = por %p649_p11, %p648_p10 }
 0x119   : > { %p646_p9 = pneg %p645_p7 }
 0x11a   : > { %p652_p0 = por %p651_p13, %p650_p12 }
 0x11c   : > { %p653_p1 = pnand %p652_p0, %p646_p9 }
 0x11e   : > { %656 = shalt.err (!%p653_p1)
}
 0x11f   : > { %s712_s11 = smov 128   ;;  %s713_s18 = smov 8  }
 0x120   : > { %561 = dma.vmem_to_hbm [thread:$0]  (%p774_p4), %s802_s19, 256, %s807_s27, %s809_s28, %s712_s11, %s712_s11, %s713_s18  }
 0x121 PF: > { %p567_p2 = scmp.ge.s32.totalorder %s707_s17, 2  ;;  %s420_s21 = sand.u32 1, %s687_s12  }
 0x122   : > { %s421_s23 = scalar_lea.sflag [#allocation4], %s420_s21 }
 0x123   : > { %p564_p3 = pnand %p567_p2, %p781_p8 }
 0x125   : > { %682 = dma.done.wait (!%p564_p3), %s421_s23, 256  }
 0x126   : > { %684 = vsyncadd (!%p564_p3), %s421_s23, 4294967040  ;;  %s16_s17 = sadd.s32 1, %s707_s17   ;;  %s861_s12 = smov %s691_s13 }
 0x127   : > { %p13_p5 = scmp.ge.s32.totalorder %s16_s17, 4   ;;  %s862_s13 = smov %s695_s14 }
 0x128   : > { %s863_s14 = smov %s787_s25  ;;  %s864_s15 = smov %s703_s16 }
 0x129   : > { %s865_s16 = smov %s867_s20  ;;  %15 = sbr.rel (!%p13_p5) target bundleno = 4 (0x4), region = 83 }
 0x130   :  { %426 = vsyncpa [#allocation4], 1 }
 0x131   :  { %428 = vsyncpa [#allocation4 + $0x1], 1 }

// kernel: gcn_layer_kipf.2
= control target key start
LH: loop header
LB: loop body
LE: loop exit
PB: predicated region body
PF: predicated region fallthrough
CT: control target
= control target key end

     0   :  { %s827_s9 = smov 0   ;;  %s829_s10 = smov 0   ;;  %s901_s0 = inlined_call_operand.vmem [shape: bf16[2,128,128], index: 0, kind: input, shape index: {}]   ;;  %s902_s1 = inlined_call_operand.vmem [shape: bf16[128,128], index: 1, kind: input, shape index: {}]   ;;  %s903_s2 = inlined_call_operand.vmem [shape: bf16[2,128,128], index: 2, kind: output, shape index: {}]  }
   0x1   :  { %s831_s11 = smov 0  }
   0x2 LB: > { %s24_s12 = sadd.s32 1, %s806_s10  ;;  %p580_p0 = scmp.ge.s32.totalorder %s810_s11, 1  ;;  %s810_s11 = sphi %s831_s11, %s12_s11   ;;  %s806_s10 = sphi %s829_s10, %s905_s10   ;;  %s802_s9 = sphi %s827_s9, %s904_s9  }
   0x3   : > { %p26_p1 = scmp.ge.s32.totalorder %s24_s12, 2  ;;  %p133_p2 = scmp.lt.s32.totalorder %s810_s11, 3 }
   0x5   : > { %s907_s12 = smov (%p26_p1, %s24_s12), 0  ;;  %p134_p3 = pnand %p580_p0, %p133_p2 }
   0x6   : > { %v772_v0 = vld [vmem:[%s902_s1] sm:$0xff] (!%p134_p3)   ;;  %p164_p4 = scmp.lt.s32.totalorder (!%p134_p3), %s802_s9, 1  ;;  %v773_v1 = vld [vmem:[%s902_s1 + $0x8] sm:$0xff] (!%p134_p3)   ;;  %v774_v2 = vld [vmem:[%s902_s1 + $0x10] sm:$0xff] (!%p134_p3)  }
   0x7   : > { %137 = sbr.rel (%p134_p3) target bundleno = 265 (0x109), region = 28  ;;  %700 = vmatprep.subr.bf16.mxu0 (!%p134_p3), %v772_v0  ;;  %732 = vmatprep.subr.bf16.mxu1 (!%p134_p3), %v772_v0  ;;  %v775_v3 = vld [vmem:[%s902_s1 + $0x18] sm:$0xff] (!%p134_p3)   ;;  %v776_v6 = vld [vmem:[%s902_s1 + $0x20] sm:$0xff] (!%p134_p3)   ;;  %v777_v7 = vld [vmem:[%s902_s1 + $0x28] sm:$0xff] (!%p134_p3)  }
   0x8   : > { %701 = vmatpush3.bf16.msra.mxu0 (!%p134_p3), %v772_v0  ;;  %740 = vmatpush3.bf16.msra.mxu1 (!%p134_p3), %v772_v0  ;;  %v778_v8 = vld [vmem:[%s902_s1 + $0x30] sm:$0xff] (!%p134_p3)   ;;  %v779_v9 = vld [vmem:[%s902_s1 + $0x38] sm:$0xff] (!%p134_p3)  }
   0x9   : > { %702 = vmatprep.subr.bf16.mxu0 (!%p134_p3), %v773_v1  ;;  %733 = vmatprep.subr.bf16.mxu1 (!%p134_p3), %v773_v1 }
   0xc   : > { %703 = vmatpush3.bf16.msra.mxu0 (!%p134_p3), %v773_v1  ;;  %741 = vmatpush3.bf16.msra.mxu1 (!%p134_p3), %v773_v1 }
   0xd   : > { %704 = vmatprep.subr.bf16.mxu0 (!%p134_p3), %v774_v2  ;;  %734 = vmatprep.subr.bf16.mxu1 (!%p134_p3), %v774_v2 }
   0xe   : > { %s909_s9 = smov (!%p164_p4, %s802_s9), 1 }
   0xf   : > { %s619_s19 = sshll.u32 %s909_s9, 6 }
  0x10   : > { %s862_s22 = scalar_lea.vmem %s901_s0, %s619_s19  ;;  %705 = vmatpush3.bf16.msra.mxu0 %v774_v2  ;;  %742 = vmatpush3.bf16.msra.mxu1 %v774_v2  ;;  %s181_s7 = scalar_lea.vmem %s903_s2, %s619_s19 }
  0x11   : > { %v780_v4 = vld [vmem:[%s862_s22] sm:$0xff]   ;;  %706 = vmatprep.subr.bf16.mxu0 %v775_v3  ;;  %735 = vmatprep.subr.bf16.mxu1 %v775_v3  ;;  %v782_v10 = vld [vmem:[%s862_s22 + $0x8] sm:$0xff]   ;;  %v784_v12 = vld [vmem:[%s862_s22 + $0x10] sm:$0xff]  }
  0x12   : > { %v781_v5 = vld [vmem:[%s862_s22 + $0x20] sm:$0xff]   ;;  %716 = vmatprep.mubr.bf16.mxu0 %v780_v4  ;;  %v783_v11 = vld [vmem:[%s862_s22 + $0x28] sm:$0xff]   ;;  %v785_v13 = vld [vmem:[%s862_s22 + $0x30] sm:$0xff]  }
  0x13   : > { %724 = vmatprep.mubr.bf16.mxu1 %v781_v5  ;;  %v786_v14 = vld [vmem:[%s862_s22 + $0x18] sm:$0xff]  }
  0x14   : > { %707 = vmatpush3.bf16.msra.mxu0 %v775_v3  ;;  %743 = vmatpush3.bf16.msra.mxu1 %v775_v3  ;;  %v787_v15 = vld [vmem:[%s862_s22 + $0x38] sm:$0xff]  }
  0x15   : > { %708 = vmatprep.subr.bf16.mxu0 %v776_v6  ;;  %736 = vmatprep.subr.bf16.mxu1 %v776_v6 }
  0x18   : > { %709 = vmatpush3.bf16.msra.mxu0 %v776_v6  ;;  %744 = vmatpush3.bf16.msra.mxu1 %v776_v6 }
  0x19   : > { %710 = vmatprep.subr.bf16.mxu0 %v777_v7  ;;  %737 = vmatprep.subr.bf16.mxu1 %v777_v7 }
  0x1c   : > { %711 = vmatpush3.bf16.msra.mxu0 %v777_v7  ;;  %745 = vmatpush3.bf16.msra.mxu1 %v777_v7 }
  0x1d   : > { %712 = vmatprep.subr.bf16.mxu0 %v778_v8  ;;  %738 = vmatprep.subr.bf16.mxu1 %v778_v8 }
  0x20   : > { %713 = vmatpush3.bf16.msra.mxu0 %v778_v8  ;;  %746 = vmatpush3.bf16.msra.mxu1 %v778_v8 }
  0x21   : > { %714 = vmatprep.subr.bf16.mxu0 %v779_v9  ;;  %739 = vmatprep.subr.bf16.mxu1 %v779_v9 }
  0x24   : > { %715 = vmatpush3.bf16.msra.mxu0 %v779_v9  ;;  %747 = vmatpush3.bf16.msra.mxu1 %v779_v9 }
  0x27   : > { %717 = vmatmul.mubr.bf16.vlgmr.msra.gmra.mrb[0].mxu0 %v782_v10  ;;  %725 = vmatmul.mubr.bf16.vlgmr.msra.gmra.mrb[0].mxu1 %v783_v11 }
  0x28   : > { %720 = vmatprep.mubr.bf16.mxu0 %v784_v12  ;;  %728 = vmatprep.mubr.bf16.mxu1 %v785_v13 }
  0x2f   : > { %721 = vmatmul.mubr.bf16.gmra.mrb[4].mxu0 %v786_v14  ;;  %729 = vmatmul.mubr.bf16.gmra.mrb[4].mxu1 %v787_v15 }
  0xfa   : > { %v718_v16 = vpop.f32.mrb[0].mxu0  ;;  %v726_v17 = vpop.f32.mrb[0].mxu1 }
  0xfb   : > { %v346_v18 = vpop.f32.mrb[1].mxu0  ;;  %v378_v19 = vpop.f32.mrb[1].mxu1 }
  0xfc   : > { %v719_v20 = vpop.f32.mrb[2].mxu0  ;;  %v727_v21 = vpop.f32.mrb[2].mxu1 }
  0xfd   : > { %v645_v22 = vpack.c.bf16 %v719_v20, %v718_v16  ;;  %v665_v23 = vpack.c.bf16 %v727_v21, %v726_v17  ;;  %v349_v24 = vpop.f32.mrb[3].mxu0  ;;  %v381_v25 = vpop.f32.mrb[3].mxu1 }
  0xfe   : > { %v640_v26 = vpack.c.bf16 %v349_v24, %v346_v18  ;;  %v660_v27 = vpack.c.bf16 %v381_v25, %v378_v19 }
  0xff   : > { %677 = vst [vmem:[%s181_s7 + $0x8] sm:$0xff] %v645_v22   ;;  %681 = vst [vmem:[%s181_s7 + $0x28] sm:$0xff] %v665_v23  }
 0x100   : > { %641 = vst [vmem:[%s181_s7] sm:$0xff] %v640_v26   ;;  %680 = vst [vmem:[%s181_s7 + $0x20] sm:$0xff] %v660_v27  }
 0x102   : > { %v722_v28 = vpop.f32.mrb[4].mxu0  ;;  %v730_v29 = vpop.f32.mrb[4].mxu1 }
 0x103   : > { %v362_v30 = vpop.f32.mrb[5].mxu0  ;;  %v394_v31 = vpop.f32.mrb[5].mxu1 }
 0x104   : > { %v723_v32 = vpop.f32.mrb[6].mxu0  ;;  %v731_v33 = vpop.f32.mrb[6].mxu1 }
 0x105   : > { %v655_v34 = vpack.c.bf16 %v723_v32, %v722_v28  ;;  %v675_v35 = vpack.c.bf16 %v731_v33, %v730_v29  ;;  %v365_v36 = vpop.f32.mrb[7].mxu0  ;;  %v397_v37 = vpop.f32.mrb[7].mxu1 }
 0x106   : > { %v650_v38 = vpack.c.bf16 %v365_v36, %v362_v30  ;;  %v670_v39 = vpack.c.bf16 %v397_v37, %v394_v31 }
 0x107   : > { %679 = vst [vmem:[%s181_s7 + $0x18] sm:$0xff] %v655_v34   ;;  %683 = vst [vmem:[%s181_s7 + $0x38] sm:$0xff] %v675_v35  }
 0x108   : > { %678 = vst [vmem:[%s181_s7 + $0x10] sm:$0xff] %v650_v38   ;;  %682 = vst [vmem:[%s181_s7 + $0x30] sm:$0xff] %v670_v39  }
 0x109 PF: > { %s12_s11 = sadd.s32 1, %s810_s11   ;;  %s904_s9 = smov %s806_s10 }
 0x10a   : > { %p9_p5 = scmp.ge.s32.totalorder %s12_s11, 4   ;;  %s905_s10 = smov %s907_s12 }
 0x10c   :  { %11 = sbr.rel (!%p9_p5) target bundleno = 2 (0x2), region = 58 }

</bundles_post_ra>
